<compile_context>
chip_gen: v7x
topology: tpu7x:2x2x1
jax: 0.10.0
libtpu: 0.0.40
codegen_flags: <defaults>
</compile_context>

<pallas_src>
import math
from typing import List

import jax
import jax.numpy as jnp
from jax.experimental import pallas as pl
from jax.experimental.pallas import tpu as pltpu


def _round_up(x: int, m: int) -> int:
    return ((x + m - 1) // m) * m


def _cdiv(a: int, b: int) -> int:
    return (a + b - 1) // b


def _make_mlp_kernel(num_layers: int, num_k_tiles: int, dims_pad: List[int]):
    """Fused MLP kernel.

    Grid: (batch_tiles, k_tiles). Kernel args:
        (x_tile, w0, b0, w1, b1, ..., w_{L-1}, b_{L-1}, out_tile,
         acc_scratch_f32, h_scratch_bf16)
    Layer 0's contraction is tiled along the k axis and accumulated into
    `acc_scratch` (bias folded into the k==0 write); layers 1..L-1 run in the
    k == last epilogue with activations staged through the bf16 VMEM scratch.
    ReLU after every linear except the last; dropout is identity (eval).
    """
    proj_pad = dims_pad[1]

    def kernel(*refs):
        x_ref = refs[0]
        param_refs = refs[1:1 + 2 * num_layers]
        out_ref = refs[1 + 2 * num_layers]
        acc_ref = refs[2 + 2 * num_layers]
        h_ref = refs[3 + 2 * num_layers]

        k = pl.program_id(1)

        # Layer 0 partial product for this K tile: bf16 x bf16 -> f32.
        part = jnp.dot(
            x_ref[...], param_refs[0][...], preferred_element_type=jnp.float32
        )

        @pl.when(k == 0)
        def _():
            # Fold layer-0 bias into the first partial product (saves a
            # zero-init pass over acc and the epilogue bias add).
            acc_ref[...] = part + param_refs[1][...]

        @pl.when(k > 0)
        def _():
            acc_ref[...] += part

        @pl.when(k == num_k_tiles - 1)
        def _():
            # Epilogue: bias is already in acc; ReLU and stage the bf16
            # activations in VMEM scratch for the remaining small layers.
            cur_w = proj_pad
            h_ref[:, :cur_w] = jnp.maximum(acc_ref[...], 0.0).astype(h_ref.dtype)
            for i in range(1, num_layers):
                w_ref = param_refs[2 * i]
                b_ref = param_refs[2 * i + 1]
                out_w = w_ref.shape[1]
                y = jnp.dot(
                    h_ref[:, :cur_w], w_ref[...],
                    preferred_element_type=jnp.float32,
                ) + b_ref[...]
                if i < num_layers - 1:
                    h_ref[:, :out_w] = jnp.maximum(y, 0.0).astype(h_ref.dtype)
                    cur_w = out_w
                else:
                    out_ref[...] = y.astype(out_ref.dtype)

    return kernel


class FullEmbeddingMLPPallas:
    """JAX/Pallas equivalent of the PyTorch FullEmbeddingMLP (eval forward)."""

    LANE = 128

    def __init__(
        self,
        seq_len: int,
        embed_dim: int,
        projection_dim: int,
        mlp_hidden_dims: List[int],
        mlp_dropout_rates: List[float],
        key: jax.Array,
    ):
        if len(mlp_dropout_rates) != len(mlp_hidden_dims) + 1:
            raise ValueError(
                f"Dropout rates length error. Expected {len(mlp_hidden_dims) + 1}, "
                f"got {len(mlp_dropout_rates)}"
            )
        self.seq_len = seq_len
        self.embed_dim = embed_dim

        d_in = seq_len * embed_dim
        dims = [d_in, projection_dim] + list(mlp_hidden_dims) + [1]
        self.dims = dims

        proj_pad = _round_up(projection_dim, self.LANE)

        # K tile for layer 0: large tiles amortize the ~0.35us/step overhead
        # and produce bandwidth-efficient DMAs; cap so the double-buffered w0
        # block stays <= 8 MiB of VMEM.
        max_tk_w0 = max(self.LANE, (((8 << 20) // (4 * proj_pad)) // self.LANE) * self.LANE)
        target_tk = max(self.LANE, min(2048, max_tk_w0))
        d_in_128 = _round_up(d_in, self.LANE)
        self.num_k_tiles = max(1, _cdiv(d_in_128, target_tk))
        self.tk = _round_up(_cdiv(d_in_128, self.num_k_tiles), self.LANE)
        self.d_in_pad = self.tk * self.num_k_tiles

        # Pad every layer dim to a multiple of 128 (lane-dense matmuls/output).
        dims_pad = [self.d_in_pad] + [_round_up(d, self.LANE) for d in dims[1:]]
        self.dims_pad = dims_pad

        # Deterministic parameter init (Kaiming-uniform-ish, like torch Linear).
        self.weights_f32 = []  # unpadded f32, for the pure-JAX reference
        self.biases_f32 = []
        self.weights = []      # zero-padded, bf16 (MXU operands)
        self.biases = []       # zero-padded, f32  (VPU bias add)
        for i in range(len(dims) - 1):
            fan_in, fan_out = dims[i], dims[i + 1]
            key, wk, bk = jax.random.split(key, 3)
            bound = 1.0 / math.sqrt(fan_in)
            w = jax.random.uniform(
                wk, (fan_in, fan_out), jnp.float32, minval=-bound, maxval=bound
            )
            b = jax.random.uniform(
                bk, (1, fan_out), jnp.float32, minval=-bound, maxval=bound
            )
            self.weights_f32.append(w)
            self.biases_f32.append(b)

            in_pad, out_pad = dims_pad[i], dims_pad[i + 1]
            w_pad = jnp.zeros((in_pad, out_pad), jnp.float32)
            w_pad = w_pad.at[:fan_in, :fan_out].set(w)
            b_pad = jnp.zeros((1, out_pad), jnp.float32)
            b_pad = b_pad.at[:, :fan_out].set(b)
            self.weights.append(w_pad.astype(jnp.bfloat16))
            self.biases.append(b_pad)

        # TODO(synk): nn.Dropout is stochastic in train mode; here it is the
        # identity (inference semantics).

        # Jit the whole forward so pad/cast/slice fuse with the pallas_call.
        self._fwd = jax.jit(self._forward_impl)

    def __call__(self, x: jax.Array) -> jax.Array:
        return self._fwd(x, self.weights, self.biases)

    def _forward_impl(self, x, weights, biases):
        # Match torch forward: squeeze singleton channel dim, then flatten.
        if x.ndim == 4 and x.shape[1] == 1:
            x = jnp.squeeze(x, axis=1)
        B = x.shape[0]
        d_in = self.seq_len * self.embed_dim
        # Cast once to bf16, then a single zero-pad into the kernel layout.
        x_flat = x.reshape(B, -1).astype(jnp.bfloat16)
        assert x_flat.shape[1] == d_in

        tk = self.tk
        num_k_tiles = self.num_k_tiles
        dims_pad = self.dims_pad
        proj_pad = dims_pad[1]
        out_pad = dims_pad[-1]
        max_pad = max(dims_pad[1:])
        num_layers = len(weights)

        # VMEM bytes for the small resident (constant-index) params
        # (still double-buffered by the BlockSpec pipeline).
        resident = 2 * biases[0].size * 4
        for w, b in zip(weights[1:], biases[1:]):
            resident += 2 * (w.size * 2 + b.size * 4)

        # Pick tile_b under an explicit VMEM budget (safe on v7x's 64 MiB).
        per_row = 2 * tk * 2 + proj_pad * 4 + max_pad * 2 + 2 * out_pad * 4
        fixed = 2 * tk * proj_pad * 2 + resident
        vmem_target = 40 << 20
        max_rows = max(128, (vmem_target - fixed) // max(per_row, 1))
        max_tile_b = max(128, min(1024, (max_rows // 128) * 128))

        B128 = _round_up(max(B, 1), 128)
        n128 = B128 // 128
        n_tiles = _cdiv(B128, max_tile_b)
        if B >= 256 and n_tiles == 1:
            n_tiles = 2  # v7x megacore: keep both TensorCores busy
        n_tiles = min(n_tiles, n128)
        tile_b = 128 * _cdiv(n128, n_tiles)
        b_pad = tile_b * n_tiles

        # Single fused zero-pad (padded K region MUST stay zero: the zero rows
        # of w0 then contribute exactly 0 to the accumulator).
        x_p = jnp.pad(x_flat, ((0, b_pad - B), (0, self.d_in_pad - d_in)))

        kernel = _make_mlp_kernel(num_layers, num_k_tiles, dims_pad)

        operands = [x_p, weights[0], biases[0]]
        in_specs = [
            # x streams along batch and k (double-buffered by the pipeline).
            pl.BlockSpec((tile_b, tk), lambda i, k: (i, k)),
            # w0 streams along k only; stays put across batch tiles.
            pl.BlockSpec((tk, proj_pad), lambda i, k: (k, 0)),
            # b0 and all small weights/biases: constant index -> VMEM-resident.
            pl.BlockSpec(biases[0].shape, lambda i, k: (0, 0)),
        ]
        for w, b in zip(weights[1:], biases[1:]):
            operands += [w, b]
            in_specs += [
                pl.BlockSpec(w.shape, lambda i, k: (0, 0)),
                pl.BlockSpec(b.shape, lambda i, k: (0, 0)),
            ]

        budget = (
            2 * tile_b * tk * 2          # x, double-buffered
            + 2 * tk * proj_pad * 2      # w0, double-buffered
            + tile_b * proj_pad * 4      # f32 accumulator scratch
            + tile_b * max_pad * 2       # bf16 activation scratch
            + 2 * tile_b * out_pad * 4   # output, double-buffered
            + resident
        )
        vmem_limit = int(min(48 << 20, max(budget * 5 // 4 + (2 << 20), 16 << 20)))

        out = pl.pallas_call(
            kernel,
            out_shape=jax.ShapeDtypeStruct((b_pad, out_pad), jnp.float32),
            grid_spec=pltpu.PrefetchScalarGridSpec(
                num_scalar_prefetch=0,
                grid=(b_pad // tile_b, num_k_tiles),
                in_specs=in_specs,
                out_specs=pl.BlockSpec((tile_b, out_pad), lambda i, k: (i, 0)),
                scratch_shapes=[
                    pltpu.VMEM((tile_b, proj_pad), jnp.float32),
                    pltpu.VMEM((tile_b, max_pad), jnp.bfloat16),
                ],
            ),
            compiler_params=pltpu.CompilerParams(
                dimension_semantics=("parallel", "arbitrary"),
                vmem_limit_bytes=vmem_limit,
            ),
        )(*operands)

        # Column 0 of the padded output is the real (out_features == 1) result.
        return out[:B, :1]

    # Pure-JAX reference that mirrors the kernel's dtype path
    # (bf16 MXU operands, f32 accumulation/bias/ReLU).
    def reference(self, x: jax.Array) -> jax.Array:
        if x.ndim == 4 and x.shape[1] == 1:
            x = jnp.squeeze(x, axis=1)
        h = x.reshape(x.shape[0], -1).astype(jnp.float32)
        n = len(self.weights_f32)
        acc = None
        for i, (w, b) in enumerate(zip(self.weights_f32, self.biases_f32)):
            acc = jnp.dot(
                h.astype(jnp.bfloat16),
                w.astype(jnp.bfloat16),
                preferred_element_type=jnp.float32,
            ) + b
            if i < n - 1:
                h = jnp.maximum(acc, 0.0)
        return acc


if __name__ == "__main__":
    key = jax.random.PRNGKey(0)
    key, pkey, xkey = jax.random.split(key, 3)

    # Small shapes consistent with the module's forward.
    seq_len = 8
    embed_dim = 32
    projection_dim = 128
    mlp_hidden_dims = [64, 32]
    mlp_dropout_rates = [0.1, 0.1, 0.1]
    batch = 2

    model = FullEmbeddingMLPPallas(
        seq_len, embed_dim, projection_dim, mlp_hidden_dims, mlp_dropout_rates, pkey
    )

    # Input mirrors a Whisper embedding with an extra singleton channel dim:
    # (B, 1, seq_len, embed_dim) -> squeezed inside forward.
    x = jax.random.normal(xkey, (batch, 1, seq_len, embed_dim), jnp.float32)

    out = jax.block_until_ready(model(x))
    ref = jax.block_until_ready(model.reference(x))

    assert out.shape == (batch, 1), out.shape
    assert bool(jnp.all(jnp.isfinite(out))), out
    assert jnp.allclose(out, ref, atol=1e-2, rtol=1e-2), (out, ref)

    print("KERNEL_OK")
</pallas_src>

<mosaic_0001>
module attributes {stable_mosaic.version = 11 : i64} {
  func.func @kernel(%arg0: i32, %arg1: i32, %arg2: memref<128x256xbf16, #tpu.memory_space<vmem>>, %arg3: memref<256x128xbf16, #tpu.memory_space<vmem>>, %arg4: memref<1x128xf32, #tpu.memory_space<vmem>>, %arg5: memref<128x128xbf16, #tpu.memory_space<vmem>>, %arg6: memref<1x128xf32, #tpu.memory_space<vmem>>, %arg7: memref<128x128xbf16, #tpu.memory_space<vmem>>, %arg8: memref<1x128xf32, #tpu.memory_space<vmem>>, %arg9: memref<128x128xbf16, #tpu.memory_space<vmem>>, %arg10: memref<1x128xf32, #tpu.memory_space<vmem>>, %arg11: memref<128x128xf32, #tpu.memory_space<vmem>>, %arg12: memref<128x128xf32, #tpu.memory_space<vmem>>, %arg13: memref<128x128xbf16, #tpu.memory_space<vmem>>) attributes {dimension_semantics = [#tpu.dimension_semantics<parallel>, #tpu.dimension_semantics<arbitrary>], iteration_bounds = array<i64: 1, 1>, scalar_prefetch = 0 : i64, scratch_operands = 2 : i64, tpu.core_type = #tpu.core_type<tc>, window_params = [{transform_indices = @transform_0, window_bounds = array<i64: 128, 256>}, {transform_indices = @transform_1, window_bounds = array<i64: 256, 128>}, {pipeline_mode = #tpu.pipeline_mode<synchronous>, transform_indices = @transform_2, window_bounds = array<i64: 1, 128>}, {pipeline_mode = #tpu.pipeline_mode<synchronous>, transform_indices = @transform_3, window_bounds = array<i64: 128, 128>}, {pipeline_mode = #tpu.pipeline_mode<synchronous>, transform_indices = @transform_4, window_bounds = array<i64: 1, 128>}, {pipeline_mode = #tpu.pipeline_mode<synchronous>, transform_indices = @transform_5, window_bounds = array<i64: 128, 128>}, {pipeline_mode = #tpu.pipeline_mode<synchronous>, transform_indices = @transform_6, window_bounds = array<i64: 1, 128>}, {pipeline_mode = #tpu.pipeline_mode<synchronous>, transform_indices = @transform_7, window_bounds = array<i64: 128, 128>}, {pipeline_mode = #tpu.pipeline_mode<synchronous>, transform_indices = @transform_8, window_bounds = array<i64: 1, 128>}, {transform_indices = @transform_9, window_bounds = array<i64: 128, 128>}]} {
    %c0 = arith.constant 0 : index
    %c0_0 = arith.constant 0 : index
    %0 = vector.load %arg2[%c0, %c0_0] : memref<128x256xbf16, #tpu.memory_space<vmem>>, vector<128x256xbf16>
    %c0_1 = arith.constant 0 : index
    %c0_2 = arith.constant 0 : index
    %1 = vector.load %arg3[%c0_1, %c0_2] : memref<256x128xbf16, #tpu.memory_space<vmem>>, vector<256x128xbf16>
    %cst = arith.constant dense<0.000000e+00> : vector<128x128xf32>
    %2 = tpu.matmul %0, %1, %cst {dimension_numbers = #tpu.dot_dimension_numbers<[1], [0], [0], [1], [0, 0, 1, 1], [], []>} : vector<128x256xbf16>, vector<256x128xbf16>, vector<128x128xf32> -> vector<128x128xf32>
    %c0_i32 = arith.constant 0 : i32
    %3 = arith.cmpi eq, %arg1, %c0_i32 : i32
    %4 = arith.extui %3 : i1 to i32
    %c0_i32_3 = arith.constant 0 : i32
    %5 = arith.cmpi ne, %4, %c0_i32_3 : i32
    scf.if %5 {
      %c0_8 = arith.constant 0 : index
      %c0_9 = arith.constant 0 : index
      %12 = vector.load %arg4[%c0_8, %c0_9] : memref<1x128xf32, #tpu.memory_space<vmem>>, vector<1x128xf32>
      %13 = vector.broadcast %12 : vector<1x128xf32> to vector<128x128xf32>
      %14 = arith.addf %2, %13 : vector<128x128xf32>
      %c0_10 = arith.constant 0 : index
      %c0_11 = arith.constant 0 : index
      %15 = vector.load %arg12[%c0_10, %c0_11] : memref<128x128xf32, #tpu.memory_space<vmem>>, vector<128x128xf32>
      tpu.vector_store %arg12[%c0_10, %c0_11], %14 {strides = array<i32>} : memref<128x128xf32, #tpu.memory_space<vmem>>, vector<128x128xf32>,
    } else {
    }
    %c0_i32_4 = arith.constant 0 : i32
    %6 = arith.cmpi sgt, %arg1, %c0_i32_4 : i32
    %7 = arith.extui %6 : i1 to i32
    %c0_i32_5 = arith.constant 0 : i32
    %8 = arith.cmpi ne, %7, %c0_i32_5 : i32
    scf.if %8 {
      %c0_8 = arith.constant 0 : index
      %c0_9 = arith.constant 0 : index
      %12 = vector.load %arg12[%c0_8, %c0_9] : memref<128x128xf32, #tpu.memory_space<vmem>>, vector<128x128xf32>
      %13 = arith.addf %12, %2 : vector<128x128xf32>
      %c0_10 = arith.constant 0 : index
      %c0_11 = arith.constant 0 : index
      %14 = vector.load %arg12[%c0_10, %c0_11] : memref<128x128xf32, #tpu.memory_space<vmem>>, vector<128x128xf32>
      tpu.vector_store %arg12[%c0_10, %c0_11], %13 {strides = array<i32>} : memref<128x128xf32, #tpu.memory_space<vmem>>, vector<128x128xf32>,
    } else {
    }
    %c0_i32_6 = arith.constant 0 : i32
    %9 = arith.cmpi eq, %arg1, %c0_i32_6 : i32
    %10 = arith.extui %9 : i1 to i32
    %c0_i32_7 = arith.constant 0 : i32
    %11 = arith.cmpi ne, %10, %c0_i32_7 : i32
    scf.if %11 {
      %c0_8 = arith.constant 0 : index
      %c0_9 = arith.constant 0 : index
      %12 = vector.load %arg12[%c0_8, %c0_9] : memref<128x128xf32, #tpu.memory_space<vmem>>, vector<128x128xf32>
      %cst_10 = arith.constant 0.000000e+00 : f32
      %13 = vector.broadcast %cst_10 : f32 to vector<128x128xf32>
      %14 = arith.maximumf %12, %13 : vector<128x128xf32>
      %15 = arith.truncf %14 : vector<128x128xf32> to vector<128x128xbf16>
      %c0_11 = arith.constant 0 : index
      %c0_12 = arith.constant 0 : index
      %16 = vector.load %arg13[%c0_11, %c0_12] : memref<128x128xbf16, #tpu.memory_space<vmem>>, vector<128x128xbf16>
      tpu.vector_store %arg13[%c0_11, %c0_12], %15 {strides = array<i32>} : memref<128x128xbf16, #tpu.memory_space<vmem>>, vector<128x128xbf16>,
      %c0_13 = arith.constant 0 : index
      %c0_14 = arith.constant 0 : index
      %17 = vector.load %arg13[%c0_13, %c0_14] : memref<128x128xbf16, #tpu.memory_space<vmem>>, vector<128x128xbf16>
      %c0_15 = arith.constant 0 : index
      %c0_16 = arith.constant 0 : index
      %18 = vector.load %arg5[%c0_15, %c0_16] : memref<128x128xbf16, #tpu.memory_space<vmem>>, vector<128x128xbf16>
      %cst_17 = arith.constant dense<0.000000e+00> : vector<128x128xf32>
      %19 = tpu.matmul %17, %18, %cst_17 {dimension_numbers = #tpu.dot_dimension_numbers<[1], [0], [0], [1], [0, 0, 1, 1], [], []>} : vector<128x128xbf16>, vector<128x128xbf16>, vector<128x128xf32> -> vector<128x128xf32>
      %c0_18 = arith.constant 0 : index
      %c0_19 = arith.constant 0 : index
      %20 = vector.load %arg6[%c0_18, %c0_19] : memref<1x128xf32, #tpu.memory_space<vmem>>, vector<1x128xf32>
      %21 = vector.broadcast %20 : vector<1x128xf32> to vector<128x128xf32>
      %22 = arith.addf %19, %21 : vector<128x128xf32>
      %cst_20 = arith.constant 0.000000e+00 : f32
      %23 = vector.broadcast %cst_20 : f32 to vector<128x128xf32>
      %24 = arith.maximumf %22, %23 : vector<128x128xf32>
      %25 = arith.truncf %24 : vector<128x128xf32> to vector<128x128xbf16>
      %c0_21 = arith.constant 0 : index
      %c0_22 = arith.constant 0 : index
      %26 = vector.load %arg13[%c0_21, %c0_22] : memref<128x128xbf16, #tpu.memory_space<vmem>>, vector<128x128xbf16>
      tpu.vector_store %arg13[%c0_21, %c0_22], %25 {strides = array<i32>} : memref<128x128xbf16, #tpu.memory_space<vmem>>, vector<128x128xbf16>,
      %c0_23 = arith.constant 0 : index
      %c0_24 = arith.constant 0 : index
      %27 = vector.load %arg13[%c0_23, %c0_24] : memref<128x128xbf16, #tpu.memory_space<vmem>>, vector<128x128xbf16>
      %c0_25 = arith.constant 0 : index
      %c0_26 = arith.constant 0 : index
      %28 = vector.load %arg7[%c0_25, %c0_26] : memref<128x128xbf16, #tpu.memory_space<vmem>>, vector<128x128xbf16>
      %cst_27 = arith.constant dense<0.000000e+00> : vector<128x128xf32>
      %29 = tpu.matmul %27, %28, %cst_27 {dimension_numbers = #tpu.dot_dimension_numbers<[1], [0], [0], [1], [0, 0, 1, 1], [], []>} : vector<128x128xbf16>, vector<128x128xbf16>, vector<128x128xf32> -> vector<128x128xf32>
      %c0_28 = arith.constant 0 : index
      %c0_29 = arith.constant 0 : index
      %30 = vector.load %arg8[%c0_28, %c0_29] : memref<1x128xf32, #tpu.memory_space<vmem>>, vector<1x128xf32>
      %31 = vector.broadcast %30 : vector<1x128xf32> to vector<128x128xf32>
      %32 = arith.addf %29, %31 : vector<128x128xf32>
      %cst_30 = arith.constant 0.000000e+00 : f32
      %33 = vector.broadcast %cst_30 : f32 to vector<128x128xf32>
      %34 = arith.maximumf %32, %33 : vector<128x128xf32>
      %35 = arith.truncf %34 : vector<128x128xf32> to vector<128x128xbf16>
      %c0_31 = arith.constant 0 : index
      %c0_32 = arith.constant 0 : index
      %36 = vector.load %arg13[%c0_31, %c0_32] : memref<128x128xbf16, #tpu.memory_space<vmem>>, vector<128x128xbf16>
      tpu.vector_store %arg13[%c0_31, %c0_32], %35 {strides = array<i32>} : memref<128x128xbf16, #tpu.memory_space<vmem>>, vector<128x128xbf16>,
      %c0_33 = arith.constant 0 : index
      %c0_34 = arith.constant 0 : index
      %37 = vector.load %arg13[%c0_33, %c0_34] : memref<128x128xbf16, #tpu.memory_space<vmem>>, vector<128x128xbf16>
      %c0_35 = arith.constant 0 : index
      %c0_36 = arith.constant 0 : index
      %38 = vector.load %arg9[%c0_35, %c0_36] : memref<128x128xbf16, #tpu.memory_space<vmem>>, vector<128x128xbf16>
      %cst_37 = arith.constant dense<0.000000e+00> : vector<128x128xf32>
      %39 = tpu.matmul %37, %38, %cst_37 {dimension_numbers = #tpu.dot_dimension_numbers<[1], [0], [0], [1], [0, 0, 1, 1], [], []>} : vector<128x128xbf16>, vector<128x128xbf16>, vector<128x128xf32> -> vector<128x128xf32>
      %c0_38 = arith.constant 0 : index
      %c0_39 = arith.constant 0 : index
      %40 = vector.load %arg10[%c0_38, %c0_39] : memref<1x128xf32, #tpu.memory_space<vmem>>, vector<1x128xf32>
      %41 = vector.broadcast %40 : vector<1x128xf32> to vector<128x128xf32>
      %42 = arith.addf %39, %41 : vector<128x128xf32>
      %c0_40 = arith.constant 0 : index
      %c0_41 = arith.constant 0 : index
      %43 = vector.load %arg11[%c0_40, %c0_41] : memref<128x128xf32, #tpu.memory_space<vmem>>, vector<128x128xf32>
      tpu.vector_store %arg11[%c0_40, %c0_41], %42 {strides = array<i32>} : memref<128x128xf32, #tpu.memory_space<vmem>>, vector<128x128xf32>,
    } else {
    }
    return
  }
  func.func @transform_0(%arg0: i32, %arg1: i32) -> (i32, i32) {
    %c0_i32 = arith.constant 0 : i32
    return %arg0, %arg1 : i32, i32
  }
  func.func @transform_1(%arg0: i32, %arg1: i32) -> (i32, i32) {
    %c0_i32 = arith.constant 0 : i32
    %c0_i32_0 = arith.constant 0 : i32
    return %arg1, %c0_i32 : i32, i32
  }
  func.func @transform_2(%arg0: i32, %arg1: i32) -> (i32, i32) {
    %c0_i32 = arith.constant 0 : i32
    %c0_i32_0 = arith.constant 0 : i32
    %c0_i32_1 = arith.constant 0 : i32
    return %c0_i32, %c0_i32_0 : i32, i32
  }
  func.func @transform_3(%arg0: i32, %arg1: i32) -> (i32, i32) {
    %c0_i32 = arith.constant 0 : i32
    %c0_i32_0 = arith.constant 0 : i32
    %c0_i32_1 = arith.constant 0 : i32
    return %c0_i32, %c0_i32_0 : i32, i32
  }
  func.func @transform_4(%arg0: i32, %arg1: i32) -> (i32, i32) {
    %c0_i32 = arith.constant 0 : i32
    %c0_i32_0 = arith.constant 0 : i32
    %c0_i32_1 = arith.constant 0 : i32
    return %c0_i32, %c0_i32_0 : i32, i32
  }
  func.func @transform_5(%arg0: i32, %arg1: i32) -> (i32, i32) {
    %c0_i32 = arith.constant 0 : i32
    %c0_i32_0 = arith.constant 0 : i32
    %c0_i32_1 = arith.constant 0 : i32
    return %c0_i32, %c0_i32_0 : i32, i32
  }
  func.func @transform_6(%arg0: i32, %arg1: i32) -> (i32, i32) {
    %c0_i32 = arith.constant 0 : i32
    %c0_i32_0 = arith.constant 0 : i32
    %c0_i32_1 = arith.constant 0 : i32
    return %c0_i32, %c0_i32_0 : i32, i32
  }
  func.func @transform_7(%arg0: i32, %arg1: i32) -> (i32, i32) {
    %c0_i32 = arith.constant 0 : i32
    %c0_i32_0 = arith.constant 0 : i32
    %c0_i32_1 = arith.constant 0 : i32
    return %c0_i32, %c0_i32_0 : i32, i32
  }
  func.func @transform_8(%arg0: i32, %arg1: i32) -> (i32, i32) {
    %c0_i32 = arith.constant 0 : i32
    %c0_i32_0 = arith.constant 0 : i32
    %c0_i32_1 = arith.constant 0 : i32
    return %c0_i32, %c0_i32_0 : i32, i32
  }
  func.func @transform_9(%arg0: i32, %arg1: i32) -> (i32, i32) {
    %c0_i32 = arith.constant 0 : i32
    %c0_i32_0 = arith.constant 0 : i32
    return %arg0, %c0_i32 : i32, i32
  }
}

</mosaic_0001>

<bundles_post_ra>
// kernel: _forward_impl.1
= control target key start
LH: loop header
LB: loop body
LE: loop exit
PB: predicated region body
PF: predicated region fallthrough
CT: control target
= control target key end

     0   :  { %14 = vsyncpa [#allocation5], 0  ;;  %s1877_s0 = inlined_call_operand.vmem [shape: bf16[128,256], index: 0, kind: input, shape index: {}]   ;;  %s1878_s1 = inlined_call_operand.vmem [shape: bf16[256,128], index: 1, kind: input, shape index: {}]   ;;  %s1879_s2 = inlined_call_operand.vmem [shape: f32[1,128], index: 2, kind: input, shape index: {}]   ;;  %s1880_s3 = inlined_call_operand.hbm [shape: bf16[128,128], index: 3, kind: input, shape index: {}]   ;;  %s1881_s4 = inlined_call_operand.vmem [shape: f32[1,128], index: 4, kind: input, shape index: {}]   ;;  %s1882_s5 = inlined_call_operand.hbm [shape: bf16[128,128], index: 5, kind: input, shape index: {}]   ;;  %s1883_s6 = inlined_call_operand.vmem [shape: f32[1,128], index: 6, kind: input, shape index: {}]   ;;  %s1884_s7 = inlined_call_operand.hbm [shape: bf16[128,128], index: 7, kind: input, shape index: {}]   ;;  %s1885_s8 = inlined_call_operand.vmem [shape: f32[1,128], index: 8, kind: input, shape index: {}]   ;;  %s1886_s9 = inlined_call_operand.vmem [shape: f32[128,128], index: 9, kind: output, shape index: {}]  }
   0x1   :  { %15 = vsyncpa [#allocation7], 0  ;;  %s1578_s30 = smov [#allocation6]   ;;  %s1579_s11 = smov [#allocation4]  }
   0x2   :  { %s41_s10 = sshll.u32 %s1578_s30, 4  ;;  %s27_s12 = sshll.u32 %s1579_s11, 4  ;;  %s42_s10 = int_to_ptr.vmem [resolvable:$true] %s41_s10  ;;  %s1633_s12 = int_to_ptr.vmem [resolvable:$true] %s27_s12 }
   0x3   :  { %s1508_s15 = scalar_lea.hbm %s1882_s5, 1024 }
   0x4   :  { %p1509_p0 = scmp.ne.s32.totalorder %s1882_s5, %s1508_s15  ;;  %p1512_p1 = scmp.lt.u32.totalorder %s1508_s15, %s1882_s5 }
   0x6   :  { %p1514_p2 = pnand %p1512_p1, %p1509_p0 }
   0x8   :  { %1517 = shalt.err (!%p1514_p2)
}
   0x9   :  { %s1518_s20 = scalar_lea.vmem %s42_s10, 1024  ;;  %p1523_p4 = scmp.lt.s32.totalorder %s42_s10, %s42_s10 }
   0xa   :  { %p1519_p3 = scmp.ne.s32.totalorder %s42_s10, %s1518_s20  ;;  %p1524_p5 = scmp.lt.s32.totalorder %s1518_s20, %s1518_s20 }
   0xc   :  { %p1525_p6 = por %p1524_p5, %p1523_p4 }
   0xe   :  { %p1526_p7 = pnand %p1525_p6, %p1519_p3 }
  0x10   :  { %1529 = shalt.err (!%p1526_p7)
}
  0x11   :  { %s1580_s21 = smov 64   ;;  %s1581_s22 = smov 4  }
  0x12   :  { %47 = dma.hbm_to_vmem [thread:$0]  %s1882_s5, 1024, %s42_s10, [#allocation7], %s1580_s21, %s1580_s21, %s1581_s22  }
  0x13   :  { %s1530_s27 = scalar_lea.hbm %s1880_s3, 1024 }
  0x14   :  { %p1531_p8 = scmp.ne.s32.totalorder %s1880_s3, %s1530_s27  ;;  %p1534_p9 = scmp.lt.u32.totalorder %s1530_s27, %s1880_s3 }
  0x16   :  { %p1536_p10 = pnand %p1534_p9, %p1531_p8 }
  0x18   :  { %1539 = shalt.err (!%p1536_p10)
}
  0x19   :  { %s1540_s13 = scalar_lea.vmem %s1633_s12, 1024  ;;  %p1545_p12 = scmp.lt.s32.totalorder %s1633_s12, %s1633_s12 }
  0x1a   :  { %p1541_p11 = scmp.ne.s32.totalorder %s1633_s12, %s1540_s13  ;;  %p1546_p13 = scmp.lt.s32.totalorder %s1540_s13, %s1540_s13 }
  0x1c   :  { %p1547_p0 = por %p1546_p13, %p1545_p12 }
  0x1e   :  { %p1548_p1 = pnand %p1547_p0, %p1541_p11 }
  0x20   :  { %1551 = shalt.err (!%p1548_p1)
}
  0x21   :  { %33 = dma.hbm_to_vmem [thread:$0]  %s1880_s3, 1024, %s1633_s12, [#allocation5], %s1580_s21, %s1580_s21, %s1581_s22  }
  0x22   :  { %s1582_s14 = smov [#allocation8]   ;;  %s1552_s18 = scalar_lea.hbm %s1884_s7, 1024 }
  0x23   :  { %s55_s15 = sshll.u32 %s1582_s14, 4  ;;  %p1553_p2 = scmp.ne.s32.totalorder %s1884_s7, %s1552_s18  ;;  %s56_s15 = int_to_ptr.vmem [resolvable:$true] %s55_s15 }
  0x24   :  { %p1556_p3 = scmp.lt.u32.totalorder %s1552_s18, %s1884_s7 }
  0x26   :  { %p1558_p4 = pnand %p1556_p3, %p1553_p2 }
  0x28   :  { %1561 = shalt.err (!%p1558_p4)
}
  0x29   :  { %s1562_s25 = scalar_lea.vmem %s56_s15, 1024  ;;  %p1567_p6 = scmp.lt.s32.totalorder %s56_s15, %s56_s15 }
  0x2a   :  { %p1563_p5 = scmp.ne.s32.totalorder %s56_s15, %s1562_s25  ;;  %p1568_p7 = scmp.lt.s32.totalorder %s1562_s25, %s1562_s25 }
  0x2c   :  { %p1569_p8 = por %p1568_p7, %p1567_p6 }
  0x2e   :  { %p1570_p9 = pnand %p1569_p8, %p1563_p5 }
  0x30   :  { %1573 = shalt.err (!%p1570_p9)
}
  0x31   :  { %61 = dma.hbm_to_vmem [thread:$0]  %s1884_s7, 1024, %s56_s15, [#allocation7], %s1580_s21, %s1580_s21, %s1581_s22  }
  0x32   :  { %1574 = dma.done.wait [#allocation5], 1024  }
  0x33   :  { %1575 = vsyncadd [#allocation5], 4294966272 }
  0x34   :  { %1576 = dma.done.wait [#allocation7], 2048  }
  0x35   :  { %1577 = vsyncadd [#allocation7], 4294965248  ;;  %v1444_v0 = vld [vmem:[%s1878_s1 + $0x40] sm:$0xff]   ;;  %v1446_v2 = vld [vmem:[%s1878_s1 + $0x48] sm:$0xff]  }
  0x36   :  { %v1445_v1 = vld [vmem:[%s1878_s1] sm:$0xff]   ;;  %1215 = vmatprep.subr.bf16.mxu0 %v1444_v0  ;;  %v1447_v3 = vld [vmem:[%s1878_s1 + $0x8] sm:$0xff]   ;;  %v1448_v4 = vld [vmem:[%s1878_s1 + $0x50] sm:$0xff]  }
  0x37   :  { %1216 = vmatpush3.bf16.msra.mxu0 %v1445_v1  ;;  %v1449_v5 = vld [vmem:[%s1878_s1 + $0x10] sm:$0xff]   ;;  %v1450_v6 = vld [vmem:[%s1878_s1 + $0x58] sm:$0xff]   ;;  %v1452_v8 = vld [vmem:[%s1878_s1 + $0x60] sm:$0xff]  }
  0x38   :  { %1217 = vmatprep.subr.bf16.mxu0 %v1446_v2  ;;  %v1451_v7 = vld [vmem:[%s1878_s1 + $0x18] sm:$0xff]   ;;  %v1453_v9 = vld [vmem:[%s1878_s1 + $0x20] sm:$0xff]   ;;  %v1454_v10 = vld [vmem:[%s1878_s1 + $0x68] sm:$0xff]  }
  0x39   :  { %v1462_v11 = vld [vmem:[%s1877_s0 + $0x4] ss:$8 sps:$4 sm:$0xff]   ;;  %v1456_v13 = vld [vmem:[%s1878_s1 + $0x70] sm:$0xff]   ;;  %v1458_v15 = vld [vmem:[%s1878_s1 + $0x78] sm:$0xff]  }
  0x3a   :  { %v1455_v12 = vld [vmem:[%s1878_s1 + $0x28] sm:$0xff]   ;;  %330 = vmatprep.mubr.bf16.mxu0 %v1462_v11  ;;  %v1457_v14 = vld [vmem:[%s1878_s1 + $0x30] sm:$0xff]   ;;  %v1459_v16 = vld [vmem:[%s1878_s1 + $0x38] sm:$0xff]  }
  0x3b   :  { %1218 = vmatpush3.bf16.msra.mxu0 %v1447_v3  ;;  %v1484_v17 = vld [vmem:[#allocation4] sm:$0xff]   ;;  %v1485_v19 = vld [vmem:[#allocation4 + $0x8] sm:$0xff]   ;;  %v1463_v20 = vld [vmem:[%s1877_s0 + $0x14] ss:$8 sps:$4 sm:$0xff]  }
  0x3c   :  { %1219 = vmatprep.subr.bf16.mxu0 %v1448_v4  ;;  %v1460_v18 = vld [vmem:[%s1877_s0] ss:$8 sps:$4 sm:$0xff]   ;;  %1327 = vmatprep.subr.bf16.mxu1 %v1484_v17  ;;  %v1486_v21 = vld [vmem:[#allocation4 + $0x10] sm:$0xff]   ;;  %v1466_v23 = vld [vmem:[%s1877_s0 + $0x24] ss:$8 sps:$4 sm:$0xff]  }
  0x3d   :  { %1328 = vmatpush3.bf16.msra.mxu1 %v1484_v17  ;;  %v1465_v22 = vld [vmem:[%s1877_s0 + $0x10] ss:$8 sps:$4 sm:$0xff]   ;;  %v1468_v24 = vld [vmem:[%s1877_s0 + $0x20] ss:$8 sps:$4 sm:$0xff]   ;;  %v1469_v25 = vld [vmem:[%s1877_s0 + $0x34] ss:$8 sps:$4 sm:$0xff]  }
  0x3e   :  { %1329 = vmatprep.subr.bf16.mxu1 %v1485_v19  ;;  %v1471_v26 = vld [vmem:[%s1877_s0 + $0x30] ss:$8 sps:$4 sm:$0xff]   ;;  %v1472_v27 = vld [vmem:[%s1877_s0 + $0x44] ss:$8 sps:$4 sm:$0xff]   ;;  %v1474_v28 = vld [vmem:[%s1877_s0 + $0x40] ss:$8 sps:$4 sm:$0xff]  }
  0x3f   :  { %1220 = vmatpush3.bf16.msra.mxu0 %v1449_v5  ;;  %v1475_v29 = vld [vmem:[%s1877_s0 + $0x54] ss:$8 sps:$4 sm:$0xff]   ;;  %v1477_v30 = vld [vmem:[%s1877_s0 + $0x50] ss:$8 sps:$4 sm:$0xff]   ;;  %v1478_v31 = vld [vmem:[%s1877_s0 + $0x64] ss:$8 sps:$4 sm:$0xff]  }
  0x40   :  { %1221 = vmatprep.subr.bf16.mxu0 %v1450_v6  ;;  %v1480_v32 = vld [vmem:[%s1877_s0 + $0x60] ss:$8 sps:$4 sm:$0xff]   ;;  %v1481_v33 = vld [vmem:[%s1877_s0 + $0x74] ss:$8 sps:$4 sm:$0xff]   ;;  %v1483_v34 = vld [vmem:[%s1877_s0 + $0x70] ss:$8 sps:$4 sm:$0xff]  }
  0x41   :  { %1330 = vmatpush3.bf16.msra.mxu1 %v1485_v19  ;;  %v1487_v35 = vld [vmem:[#allocation4 + $0x18] sm:$0xff]   ;;  %v1488_v36 = vld [vmem:[#allocation4 + $0x20] sm:$0xff]   ;;  %v1489_v37 = vld [vmem:[#allocation4 + $0x28] sm:$0xff]  }
  0x42   :  { %1331 = vmatprep.subr.bf16.mxu1 %v1486_v21  ;;  %v1490_v38 = vld [vmem:[#allocation4 + $0x30] sm:$0xff]   ;;  %v1491_v39 = vld [vmem:[#allocation4 + $0x38] sm:$0xff]   ;;  %v1492_v40 = vld [vmem:[#allocation6] sm:$0xff]  }
  0x43   :  { %1222 = vmatpush3.bf16.msra.mxu0 %v1451_v7  ;;  %v1784_v43 = vld [vmem:[%s1879_s2] ss:$0 sm:$0xff]  ;;  %v1493_v4 = vld [vmem:[#allocation6 + $0x8] sm:$0xff]   ;;  %v1495_v17 = vld [vmem:[#allocation6 + $0x18] sm:$0xff]  }
  0x44   :  { %1223 = vmatprep.subr.bf16.mxu0 %v1452_v8 }
  0x45   :  { %1332 = vmatpush3.bf16.msra.mxu1 %v1486_v21 }
  0x46   :  { %1333 = vmatprep.subr.bf16.mxu1 %v1487_v35 }
  0x47   :  { %1224 = vmatpush3.bf16.msra.mxu0 %v1453_v9  ;;  %v1494_v9 = vld [vmem:[#allocation6 + $0x10] sm:$0xff]  }
  0x48   :  { %1225 = vmatprep.subr.bf16.mxu0 %v1454_v10 }
  0x49   :  { %1334 = vmatpush3.bf16.msra.mxu1 %v1487_v35 }
  0x4a   :  { %1335 = vmatprep.subr.bf16.mxu1 %v1488_v36 }
  0x4b   :  { %1226 = vmatpush3.bf16.msra.mxu0 %v1455_v12 }
  0x4c   :  { %1227 = vmatprep.subr.bf16.mxu0 %v1456_v13 }
  0x4d   :  { %1336 = vmatpush3.bf16.msra.mxu1 %v1488_v36 }
  0x4e   :  { %1337 = vmatprep.subr.bf16.mxu1 %v1489_v37 }
  0x4f   :  { %1228 = vmatpush3.bf16.msra.mxu0 %v1457_v14 }
  0x50   :  { %1229 = vmatprep.subr.bf16.mxu0 %v1458_v15 }
  0x51   :  { %1338 = vmatpush3.bf16.msra.mxu1 %v1489_v37 }
  0x52   :  { %1339 = vmatprep.subr.bf16.mxu1 %v1490_v38 }
  0x53   :  { %1230 = vmatpush3.bf16.msra.mxu0 %v1459_v16 }
  0x55   :  { %1340 = vmatpush3.bf16.msra.mxu1 %v1490_v38 }
  0x56   :  { %331 = vmatmul.mubr.bf16.vlgmr.msra.gmra.mrb[0].mxu0 %v1460_v18  ;;  %1341 = vmatprep.subr.bf16.mxu1 %v1491_v39 }
  0x57   :  { %338 = vmatprep.mubr.bf16.mxu0 %v1463_v20 }
  0x59   :  { %1342 = vmatpush3.bf16.msra.mxu1 %v1491_v39 }
  0x5a   :  { %1359 = vmatprep.subr.bf16.mxu1 %v1492_v40 }
  0x5e   :  { %339 = vmatmul.mubr.bf16.gmra.mrb[4].mxu0 %v1465_v22  ;;  %v1496_v22 = vld [vmem:[#allocation6 + $0x20] sm:$0xff]  }
  0x5f   :  { %346 = vmatprep.mubr.bf16.mxu0 %v1466_v23 }
  0x66   :  { %347 = vmatmul.mubr.bf16.gmra.mrb[8].mxu0 %v1468_v24 }
  0x67   :  { %354 = vmatprep.mubr.bf16.mxu0 %v1469_v25 }
  0x6e   :  { %355 = vmatmul.mubr.bf16.gmra.mrb[12].mxu0 %v1471_v26 }
  0x6f   :  { %362 = vmatprep.mubr.bf16.mxu0 %v1472_v27 }
  0x76   :  { %363 = vmatmul.mubr.bf16.gmra.mrb[16].mxu0 %v1474_v28 }
  0x77   :  { %370 = vmatprep.mubr.bf16.mxu0 %v1475_v29 }
  0x7e   :  { %371 = vmatmul.mubr.bf16.gmra.mrb[20].mxu0 %v1477_v30  ;;  %v1497_v30 = vld [vmem:[#allocation6 + $0x28] sm:$0xff]  }
  0x7f   :  { %378 = vmatprep.mubr.bf16.mxu0 %v1478_v31 }
  0x86   :  { %379 = vmatmul.mubr.bf16.gmra.mrb[24].mxu0 %v1480_v32 }
  0x87   :  { %386 = vmatprep.mubr.bf16.mxu0 %v1481_v33 }
  0x8e   :  { %387 = vmatmul.mubr.bf16.gmra.mrb[28].mxu0 %v1483_v34 }
 0x129   :  { %v1231_v41 = vpop.f32.mrb[0].mxu0 }
 0x12a   :  { %v1232_v42 = vpop.f32.mrb[1].mxu0 }
 0x12b   :  { %v1233_v44 = vadd.f32 %v1232_v42, %v1231_v41  ;;  %v1234_v45 = vpop.f32.mrb[2].mxu0 }
 0x12c   :  { %v1235_v46 = vpop.f32.mrb[3].mxu0 }
 0x12d   :  { %v1236_v47 = vadd.f32 %v1235_v46, %v1234_v45  ;;  %v406_v48 = vadd.f32 %v1233_v44, %v1784_v43 }
 0x12f   :  { %v407_v49 = vadd.f32 %v1236_v47, %v1784_v43  ;;  %v509_v51 = vmax.f32 %v406_v48, 0.0 }
 0x131   :  { %v1237_v50 = vpop.f32.mrb[4].mxu0  ;;  %v510_v52 = vmax.f32 %v407_v49, 0.0 }
 0x132   :  { %v1238_v53 = vpop.f32.mrb[5].mxu0 }
 0x133   :  { %v1239_v54 = vadd.f32 %v1238_v53, %v1237_v50  ;;  %v1240_v55 = vpop.f32.mrb[6].mxu0  ;;  %v525_v56 = vpack.c.bf16 %v510_v52, %v509_v51 }
 0x134   :  { %v1241_v57 = vpop.f32.mrb[7].mxu0 }
 0x135   :  { %v408_v58 = vadd.f32 %v1239_v54, %v1784_v43  ;;  %v1242_v59 = vadd.f32 %v1241_v57, %v1240_v55  ;;  %1343 = vmatprep.mubr.bf16.mxu1 %v525_v56 }
 0x137   :  { %v409_v60 = vadd.f32 %v1242_v59, %v1784_v43  ;;  %v511_v61 = vmax.f32 %v408_v58, 0.0 }
 0x139   :  { %v512_v62 = vmax.f32 %v409_v60, 0.0  ;;  %v1243_v63 = vpop.f32.mrb[8].mxu0 }
 0x13a   :  { %v1244_v0 = vpop.f32.mrb[9].mxu0 }
 0x13b   :  { %v1245_v1 = vadd.f32 %v1244_v0, %v1243_v63  ;;  %v1246_v2 = vpop.f32.mrb[10].mxu0  ;;  %v526_v3 = vpack.c.bf16 %v512_v62, %v511_v61 }
 0x13c   :  { %v1247_v5 = vpop.f32.mrb[11].mxu0 }
 0x13d   :  { %v410_v6 = vadd.f32 %v1245_v1, %v1784_v43  ;;  %v1248_v7 = vadd.f32 %v1247_v5, %v1246_v2  ;;  %1344 = vmatmul.mubr.bf16.vlgmr.msra.gmra.mrb[0].mxu1 %v526_v3 }
 0x13e   :  { %1360 = vmatpush3.bf16.msra.mxu1 %v1492_v40 }
 0x13f   :  { %v411_v8 = vadd.f32 %v1248_v7, %v1784_v43  ;;  %1361 = vmatprep.subr.bf16.mxu1 %v1493_v4  ;;  %v513_v10 = vmax.f32 %v410_v6, 0.0 }
 0x141   :  { %v514_v11 = vmax.f32 %v411_v8, 0.0  ;;  %v1249_v12 = vpop.f32.mrb[12].mxu0  ;;  %v1498_v8 = vld [vmem:[#allocation6 + $0x30] sm:$0xff]  }
 0x142   :  { %v1250_v13 = vpop.f32.mrb[13].mxu0  ;;  %1362 = vmatpush3.bf16.msra.mxu1 %v1493_v4 }
 0x143   :  { %v1251_v14 = vadd.f32 %v1250_v13, %v1249_v12  ;;  %v1252_v15 = vpop.f32.mrb[14].mxu0  ;;  %v527_v16 = vpack.c.bf16 %v514_v11, %v513_v10  ;;  %1363 = vmatprep.subr.bf16.mxu1 %v1494_v9  ;;  %v1500_v10 = vld [vmem:[#allocation8] sm:$0xff]   ;;  %v1501_v11 = vld [vmem:[#allocation8 + $0x8] sm:$0xff]   ;;  %v1502_v12 = vld [vmem:[#allocation8 + $0x10] sm:$0xff]  }
 0x144   :  { %v1253_v18 = vpop.f32.mrb[15].mxu0  ;;  %1391 = vmatprep.subr.bf16.mxu0 %v1500_v10  ;;  %v1504_v13 = vld [vmem:[#allocation8 + $0x20] sm:$0xff]  }
 0x145   :  { %v412_v19 = vadd.f32 %v1251_v14, %v1784_v43  ;;  %v1254_v20 = vadd.f32 %v1253_v18, %v1252_v15  ;;  %1347 = vmatprep.mubr.bf16.mxu1 %v527_v16  ;;  %1392 = vmatpush3.bf16.msra.mxu0 %v1500_v10  ;;  %v1505_v14 = vld [vmem:[#allocation8 + $0x28] sm:$0xff]   ;;  %v1805_v15 = vld [vmem:[%s1881_s4] ss:$0 sm:$0xff] }
 0x146   :  { %1364 = vmatpush3.bf16.msra.mxu1 %v1494_v9  ;;  %v1499_v9 = vld [vmem:[#allocation6 + $0x38] sm:$0xff]   ;;  %1393 = vmatprep.subr.bf16.mxu0 %v1501_v11 }
 0x147   :  { %v413_v21 = vadd.f32 %v1254_v20, %v1784_v43  ;;  %1365 = vmatprep.subr.bf16.mxu1 %v1495_v17  ;;  %v515_v23 = vmax.f32 %v412_v19, 0.0 }
 0x149   :  { %v516_v24 = vmax.f32 %v413_v21, 0.0  ;;  %v1255_v25 = vpop.f32.mrb[16].mxu0  ;;  %1394 = vmatpush3.bf16.msra.mxu0 %v1501_v11 }
 0x14a   :  { %v1256_v26 = vpop.f32.mrb[17].mxu0  ;;  %1366 = vmatpush3.bf16.msra.mxu1 %v1495_v17  ;;  %1395 = vmatprep.subr.bf16.mxu0 %v1502_v12 }
 0x14b   :  { %v1257_v27 = vadd.f32 %v1256_v26, %v1255_v25  ;;  %v1258_v28 = vpop.f32.mrb[18].mxu0  ;;  %v528_v29 = vpack.c.bf16 %v516_v24, %v515_v23  ;;  %1367 = vmatprep.subr.bf16.mxu1 %v1496_v22 }
 0x14c   :  { %v1259_v31 = vpop.f32.mrb[19].mxu0 }
 0x14d   :  { %v414_v32 = vadd.f32 %v1257_v27, %v1784_v43  ;;  %v1260_v33 = vadd.f32 %v1259_v31, %v1258_v28  ;;  %1348 = vmatmul.mubr.bf16.gmra.mrb[4].mxu1 %v528_v29  ;;  %1396 = vmatpush3.bf16.msra.mxu0 %v1502_v12 }
 0x14e   :  { %1368 = vmatpush3.bf16.msra.mxu1 %v1496_v22 }
 0x14f   :  { %v415_v34 = vadd.f32 %v1260_v33, %v1784_v43  ;;  %1369 = vmatprep.subr.bf16.mxu1 %v1497_v30  ;;  %v517_v35 = vmax.f32 %v414_v32, 0.0 }
 0x151   :  { %v518_v36 = vmax.f32 %v415_v34, 0.0  ;;  %v1261_v37 = vpop.f32.mrb[20].mxu0 }
 0x152   :  { %v1262_v38 = vpop.f32.mrb[21].mxu0  ;;  %1370 = vmatpush3.bf16.msra.mxu1 %v1497_v30 }
 0x153   :  { %v1263_v39 = vadd.f32 %v1262_v38, %v1261_v37  ;;  %v1264_v40 = vpop.f32.mrb[22].mxu0  ;;  %v529_v41 = vpack.c.bf16 %v518_v36, %v517_v35  ;;  %1371 = vmatprep.subr.bf16.mxu1 %v1498_v8 }
 0x154   :  { %v1265_v42 = vpop.f32.mrb[23].mxu0 }
 0x155   :  { %v416_v44 = vadd.f32 %v1263_v39, %v1784_v43  ;;  %v1266_v45 = vadd.f32 %v1265_v42, %v1264_v40  ;;  %1351 = vmatprep.mubr.bf16.mxu1 %v529_v41 }
 0x156   :  { %1372 = vmatpush3.bf16.msra.mxu1 %v1498_v8 }
 0x157   :  { %v417_v46 = vadd.f32 %v1266_v45, %v1784_v43  ;;  %v519_v47 = vmax.f32 %v416_v44, 0.0  ;;  %1373 = vmatprep.subr.bf16.mxu1 %v1499_v9 }
 0x159   :  { %v520_v48 = vmax.f32 %v417_v46, 0.0  ;;  %v1267_v49 = vpop.f32.mrb[24].mxu0 }
 0x15a   :  { %v1268_v50 = vpop.f32.mrb[25].mxu0  ;;  %1374 = vmatpush3.bf16.msra.mxu1 %v1499_v9  ;;  %v1506_v9 = vld [vmem:[#allocation8 + $0x30] sm:$0xff]  }
 0x15b   :  { %v1269_v51 = vadd.f32 %v1268_v50, %v1267_v49  ;;  %v1270_v52 = vpop.f32.mrb[26].mxu0  ;;  %v530_v53 = vpack.c.bf16 %v520_v48, %v519_v47  ;;  %1423 = vmatprep.subr.bf16.mxu1 %v1500_v10 }
 0x15c   :  { %v1271_v54 = vpop.f32.mrb[27].mxu0 }
 0x15d   :  { %v418_v55 = vadd.f32 %v1269_v51, %v1784_v43  ;;  %v1272_v56 = vadd.f32 %v1271_v54, %v1270_v52  ;;  %1352 = vmatmul.mubr.bf16.gmra.mrb[8].mxu1 %v530_v53 }
 0x15f   :  { %v419_v57 = vadd.f32 %v1272_v56, %v1784_v43  ;;  %v521_v58 = vmax.f32 %v418_v55, 0.0 }
 0x161   :  { %v522_v59 = vmax.f32 %v419_v57, 0.0  ;;  %v1273_v60 = vpop.f32.mrb[28].mxu0 }
 0x162   :  { %v1274_v61 = vpop.f32.mrb[29].mxu0 }
 0x163   :  { %v1275_v62 = vadd.f32 %v1274_v61, %v1273_v60  ;;  %v1276_v63 = vpop.f32.mrb[30].mxu0  ;;  %v531_v0 = vpack.c.bf16 %v522_v59, %v521_v58 }
 0x164   :  { %v1277_v1 = vpop.f32.mrb[31].mxu0 }
 0x165   :  { %v420_v2 = vadd.f32 %v1275_v62, %v1784_v43  ;;  %v1278_v3 = vadd.f32 %v1277_v1, %v1276_v63  ;;  %1355 = vmatprep.mubr.bf16.mxu1 %v531_v0 }
 0x167   :  { %v421_v4 = vadd.f32 %v1278_v3, %v1784_v43  ;;  %v523_v5 = vmax.f32 %v420_v2, 0.0  ;;  %v1503_v43 = vld [vmem:[#allocation8 + $0x18] sm:$0xff]  }
 0x168   :  { %1397 = vmatprep.subr.bf16.mxu0 %v1503_v43 }
 0x169   :  { %v524_v6 = vmax.f32 %v421_v4, 0.0  ;;  %1398 = vmatpush3.bf16.msra.mxu0 %v1503_v43 }
 0x16a   :  { %1399 = vmatprep.subr.bf16.mxu0 %v1504_v13 }
 0x16b   :  { %v532_v7 = vpack.c.bf16 %v524_v6, %v523_v5 }
 0x16d   :  { %1356 = vmatmul.mubr.bf16.gmra.mrb[12].mxu1 %v532_v7  ;;  %1400 = vmatpush3.bf16.msra.mxu0 %v1504_v13 }
 0x16e   :  { %1401 = vmatprep.subr.bf16.mxu0 %v1505_v14 }
 0x171   :  { %1402 = vmatpush3.bf16.msra.mxu0 %v1505_v14 }
 0x172   :  { %1403 = vmatprep.subr.bf16.mxu0 %v1506_v9 }
 0x175   :  { %1404 = vmatpush3.bf16.msra.mxu0 %v1506_v9 }
 0x210   :  { %v1345_v16 = vpop.f32.mrb[0].mxu1 }
 0x211   :  { %v663_v17 = vadd.f32 %v1345_v16, %v1805_v15  ;;  %v654_v18 = vpop.f32.mrb[1].mxu1 }
 0x212   :  { %v655_v19 = vadd.f32 %v1805_v15, %v654_v18  ;;  %v1346_v20 = vpop.f32.mrb[2].mxu1 }
 0x213   :  { %v666_v21 = vadd.f32 %v1346_v20, %v1805_v15  ;;  %v657_v22 = vpop.f32.mrb[3].mxu1  ;;  %v719_v24 = vmax.f32 %v663_v17, 0.0 }
 0x214   :  { %v658_v23 = vadd.f32 %v1805_v15, %v657_v22  ;;  %v717_v26 = vmax.f32 %v655_v19, 0.0 }
 0x215   :  { %v720_v25 = vmax.f32 %v666_v21, 0.0 }
 0x216   :  { %v718_v27 = vmax.f32 %v658_v23, 0.0 }
 0x217   :  { %v734_v28 = vpack.c.bf16 %v720_v25, %v719_v24 }
 0x218   :  { %v733_v29 = vpack.c.bf16 %v718_v27, %v717_v26 }
 0x21a   :  { %1375 = vmatprep.mubr.bf16.mxu1 %v733_v29 }
 0x21b   :  { %1376 = vmatmul.mubr.bf16.vlgmr.msra.gmra.mrb[16].mxu1 %v734_v28 }
 0x21c   :  { %1431 = vmatpush3.bf16.msra.mxu1 %v1500_v10  ;;  %v1507_v10 = vld [vmem:[#allocation8 + $0x38] sm:$0xff]  }
 0x21d   :  { %1424 = vmatprep.subr.bf16.mxu1 %v1501_v11  ;;  %1405 = vmatprep.subr.bf16.mxu0 %v1507_v10 }
 0x21e   :  { %1406 = vmatpush3.bf16.msra.mxu0 %v1507_v10 }
 0x220   :  { %v1349_v30 = vpop.f32.mrb[4].mxu1  ;;  %1432 = vmatpush3.bf16.msra.mxu1 %v1501_v11  ;;  %v1197_v11 = vld [vmem:[%s1883_s6] ss:$0 sm:$0xff] }
 0x221   :  { %v679_v31 = vadd.f32 %v1349_v30, %v1805_v15  ;;  %v670_v32 = vpop.f32.mrb[5].mxu1  ;;  %1425 = vmatprep.subr.bf16.mxu1 %v1502_v12 }
 0x222   :  { %v671_v33 = vadd.f32 %v1805_v15, %v670_v32  ;;  %v1350_v34 = vpop.f32.mrb[6].mxu1 }
 0x223   :  { %v682_v35 = vadd.f32 %v1350_v34, %v1805_v15  ;;  %v673_v36 = vpop.f32.mrb[7].mxu1  ;;  %v723_v38 = vmax.f32 %v679_v31, 0.0 }
 0x224   :  { %v674_v37 = vadd.f32 %v1805_v15, %v673_v36  ;;  %1433 = vmatpush3.bf16.msra.mxu1 %v1502_v12  ;;  %v721_v40 = vmax.f32 %v671_v33, 0.0 }
 0x225   :  { %v724_v39 = vmax.f32 %v682_v35, 0.0  ;;  %1426 = vmatprep.subr.bf16.mxu1 %v1503_v43 }
 0x226   :  { %v722_v41 = vmax.f32 %v674_v37, 0.0 }
 0x227   :  { %v736_v42 = vpack.c.bf16 %v724_v39, %v723_v38 }
 0x228   :  { %v735_v44 = vpack.c.bf16 %v722_v41, %v721_v40  ;;  %1434 = vmatpush3.bf16.msra.mxu1 %v1503_v43 }
 0x229   :  { %1427 = vmatprep.subr.bf16.mxu1 %v1504_v13 }
 0x22a   :  { %1379 = vmatprep.mubr.bf16.mxu1 %v735_v44 }
 0x22b   :  { %1380 = vmatmul.mubr.bf16.gmra.mrb[20].mxu1 %v736_v42 }
 0x22c   :  { %1435 = vmatpush3.bf16.msra.mxu1 %v1504_v13 }
 0x22d   :  { %1428 = vmatprep.subr.bf16.mxu1 %v1505_v14 }
 0x230   :  { %v1353_v45 = vpop.f32.mrb[8].mxu1  ;;  %1436 = vmatpush3.bf16.msra.mxu1 %v1505_v14 }
 0x231   :  { %v695_v46 = vadd.f32 %v1353_v45, %v1805_v15  ;;  %v686_v47 = vpop.f32.mrb[9].mxu1  ;;  %1429 = vmatprep.subr.bf16.mxu1 %v1506_v9 }
 0x232   :  { %v687_v48 = vadd.f32 %v1805_v15, %v686_v47  ;;  %v1354_v49 = vpop.f32.mrb[10].mxu1 }
 0x233   :  { %v698_v50 = vadd.f32 %v1354_v49, %v1805_v15  ;;  %v689_v51 = vpop.f32.mrb[11].mxu1  ;;  %v727_v53 = vmax.f32 %v695_v46, 0.0 }
 0x234   :  { %v690_v52 = vadd.f32 %v1805_v15, %v689_v51  ;;  %v725_v55 = vmax.f32 %v687_v48, 0.0  ;;  %1437 = vmatpush3.bf16.msra.mxu1 %v1506_v9 }
 0x235   :  { %v728_v54 = vmax.f32 %v698_v50, 0.0  ;;  %1430 = vmatprep.subr.bf16.mxu1 %v1507_v10 }
 0x236   :  { %v726_v56 = vmax.f32 %v690_v52, 0.0 }
 0x237   :  { %v738_v57 = vpack.c.bf16 %v728_v54, %v727_v53 }
 0x238   :  { %v737_v58 = vpack.c.bf16 %v726_v56, %v725_v55  ;;  %1438 = vmatpush3.bf16.msra.mxu1 %v1507_v10 }
 0x23a   :  { %1383 = vmatprep.mubr.bf16.mxu1 %v737_v58 }
 0x23b   :  { %1384 = vmatmul.mubr.bf16.gmra.mrb[24].mxu1 %v738_v57 }
 0x240   :  { %v1357_v59 = vpop.f32.mrb[12].mxu1 }
 0x241   :  { %v711_v60 = vadd.f32 %v1357_v59, %v1805_v15  ;;  %v702_v61 = vpop.f32.mrb[13].mxu1 }
 0x242   :  { %v703_v62 = vadd.f32 %v1805_v15, %v702_v61  ;;  %v1358_v63 = vpop.f32.mrb[14].mxu1 }
 0x243   :  { %v714_v0 = vadd.f32 %v1358_v63, %v1805_v15  ;;  %v705_v1 = vpop.f32.mrb[15].mxu1  ;;  %v731_v3 = vmax.f32 %v711_v60, 0.0 }
 0x244   :  { %v706_v2 = vadd.f32 %v1805_v15, %v705_v1  ;;  %v729_v5 = vmax.f32 %v703_v62, 0.0 }
 0x245   :  { %v732_v4 = vmax.f32 %v714_v0, 0.0 }
 0x246   :  { %v730_v6 = vmax.f32 %v706_v2, 0.0 }
 0x247   :  { %v740_v7 = vpack.c.bf16 %v732_v4, %v731_v3  ;;  %v1206_v4 = vld [vmem:[%s1885_s8] ss:$0 sm:$0xff] }
 0x248   :  { %v739_v8 = vpack.c.bf16 %v730_v6, %v729_v5 }
 0x24a   :  { %1387 = vmatprep.mubr.bf16.mxu1 %v739_v8 }
 0x24b   :  { %1388 = vmatmul.mubr.bf16.gmra.mrb[28].mxu1 %v740_v7 }
 0x2ee   :  { %v1377_v12 = vpop.f32.mrb[16].mxu1 }
 0x2ef   :  { %v871_v43 = vadd.f32 %v1377_v12, %v1197_v11  ;;  %v862_v13 = vpop.f32.mrb[17].mxu1 }
 0x2f0   :  { %v863_v14 = vadd.f32 %v1197_v11, %v862_v13  ;;  %v1378_v15 = vpop.f32.mrb[18].mxu1 }
 0x2f1   :  { %v874_v16 = vadd.f32 %v1378_v15, %v1197_v11  ;;  %v865_v17 = vpop.f32.mrb[19].mxu1  ;;  %v927_v19 = vmax.f32 %v871_v43, 0.0 }
 0x2f2   :  { %v866_v18 = vadd.f32 %v1197_v11, %v865_v17  ;;  %v925_v21 = vmax.f32 %v863_v14, 0.0 }
 0x2f3   :  { %v928_v20 = vmax.f32 %v874_v16, 0.0 }
 0x2f4   :  { %v926_v22 = vmax.f32 %v866_v18, 0.0 }
 0x2f5   :  { %v942_v23 = vpack.c.bf16 %v928_v20, %v927_v19 }
 0x2f6   :  { %v941_v24 = vpack.c.bf16 %v926_v22, %v925_v21 }
 0x2f8   :  { %1407 = vmatprep.mubr.bf16.mxu0 %v941_v24 }
 0x2f9   :  { %1408 = vmatmul.mubr.bf16.vlgmr.msra.gmra.mrb[32].mxu0 %v942_v23 }
 0x2fe   :  { %v1381_v25 = vpop.f32.mrb[20].mxu1 }
 0x2ff   :  { %v887_v26 = vadd.f32 %v1381_v25, %v1197_v11  ;;  %v878_v27 = vpop.f32.mrb[21].mxu1 }
 0x300   :  { %v879_v28 = vadd.f32 %v1197_v11, %v878_v27  ;;  %v1382_v29 = vpop.f32.mrb[22].mxu1 }
 0x301   :  { %v890_v30 = vadd.f32 %v1382_v29, %v1197_v11  ;;  %v881_v31 = vpop.f32.mrb[23].mxu1  ;;  %v931_v33 = vmax.f32 %v887_v26, 0.0 }
 0x302   :  { %v882_v32 = vadd.f32 %v1197_v11, %v881_v31  ;;  %v929_v35 = vmax.f32 %v879_v28, 0.0 }
 0x303   :  { %v932_v34 = vmax.f32 %v890_v30, 0.0 }
 0x304   :  { %v930_v36 = vmax.f32 %v882_v32, 0.0 }
 0x305   :  { %v944_v37 = vpack.c.bf16 %v932_v34, %v931_v33 }
 0x306   :  { %v943_v38 = vpack.c.bf16 %v930_v36, %v929_v35 }
 0x308   :  { %1411 = vmatprep.mubr.bf16.mxu0 %v943_v38 }
 0x309   :  { %1412 = vmatmul.mubr.bf16.gmra.mrb[36].mxu0 %v944_v37 }
 0x30e   :  { %v1385_v39 = vpop.f32.mrb[24].mxu1 }
 0x30f   :  { %v903_v40 = vadd.f32 %v1385_v39, %v1197_v11  ;;  %v894_v41 = vpop.f32.mrb[25].mxu1 }
 0x310   :  { %v895_v42 = vadd.f32 %v1197_v11, %v894_v41  ;;  %v1386_v44 = vpop.f32.mrb[26].mxu1 }
 0x311   :  { %v906_v45 = vadd.f32 %v1386_v44, %v1197_v11  ;;  %v897_v46 = vpop.f32.mrb[27].mxu1  ;;  %v935_v48 = vmax.f32 %v903_v40, 0.0 }
 0x312   :  { %v898_v47 = vadd.f32 %v1197_v11, %v897_v46  ;;  %v933_v50 = vmax.f32 %v895_v42, 0.0 }
 0x313   :  { %v936_v49 = vmax.f32 %v906_v45, 0.0 }
 0x314   :  { %v934_v51 = vmax.f32 %v898_v47, 0.0 }
 0x315   :  { %v946_v52 = vpack.c.bf16 %v936_v49, %v935_v48 }
 0x316   :  { %v945_v53 = vpack.c.bf16 %v934_v51, %v933_v50 }
 0x318   :  { %1415 = vmatprep.mubr.bf16.mxu1 %v945_v53 }
 0x319   :  { %1416 = vmatmul.mubr.bf16.vlgmr.msra.gmra.mrb[32].mxu1 %v946_v52 }
 0x31e   :  { %v1389_v54 = vpop.f32.mrb[28].mxu1 }
 0x31f   :  { %v919_v55 = vadd.f32 %v1389_v54, %v1197_v11  ;;  %v910_v56 = vpop.f32.mrb[29].mxu1 }
 0x320   :  { %v911_v57 = vadd.f32 %v1197_v11, %v910_v56  ;;  %v1390_v58 = vpop.f32.mrb[30].mxu1 }
 0x321   :  { %v922_v59 = vadd.f32 %v1390_v58, %v1197_v11  ;;  %v913_v60 = vpop.f32.mrb[31].mxu1  ;;  %v939_v62 = vmax.f32 %v919_v55, 0.0 }
 0x322   :  { %v914_v61 = vadd.f32 %v1197_v11, %v913_v60  ;;  %v937_v0 = vmax.f32 %v911_v57, 0.0 }
 0x323   :  { %v940_v63 = vmax.f32 %v922_v59, 0.0 }
 0x324   :  { %v938_v1 = vmax.f32 %v914_v61, 0.0 }
 0x325   :  { %v948_v2 = vpack.c.bf16 %v940_v63, %v939_v62 }
 0x326   :  { %v947_v3 = vpack.c.bf16 %v938_v1, %v937_v0 }
 0x328   :  { %1419 = vmatprep.mubr.bf16.mxu1 %v947_v3 }
 0x329   :  { %1420 = vmatmul.mubr.bf16.gmra.mrb[36].mxu1 %v948_v2 }
 0x3cc   :  { %v1409_v5 = vpop.f32.mrb[32].mxu0 }
 0x3cd   :  { %v1079_v6 = vadd.f32 %v1409_v5, %v1206_v4  ;;  %v1070_v7 = vpop.f32.mrb[33].mxu0 }
 0x3ce   :  { %v1071_v8 = vadd.f32 %v1206_v4, %v1070_v7  ;;  %v1410_v9 = vpop.f32.mrb[34].mxu0 }
 0x3cf   :  { %1135 = vst [vmem:[%s1886_s9 + $0x10] sm:$0xff] %v1079_v6  ;;  %v1082_v10 = vadd.f32 %v1410_v9, %v1206_v4  ;;  %v1073_v11 = vpop.f32.mrb[35].mxu0 }
 0x3d0   :  { %1133 = vst [vmem:[%s1886_s9] sm:$0xff] %v1071_v8  ;;  %v1074_v12 = vadd.f32 %v1206_v4, %v1073_v11 }
 0x3d1   :  { %1136 = vst [vmem:[%s1886_s9 + $0x18] sm:$0xff] %v1082_v10 }
 0x3d2   :  { %1134 = vst [vmem:[%s1886_s9 + $0x8] sm:$0xff] %v1074_v12 }
 0x3dc   :  { %v1413_v43 = vpop.f32.mrb[36].mxu0 }
 0x3dd   :  { %v1095_v13 = vadd.f32 %v1413_v43, %v1206_v4  ;;  %v1086_v14 = vpop.f32.mrb[37].mxu0 }
 0x3de   :  { %v1087_v15 = vadd.f32 %v1206_v4, %v1086_v14  ;;  %v1414_v16 = vpop.f32.mrb[38].mxu0 }
 0x3df   :  { %1139 = vst [vmem:[%s1886_s9 + $0x30] sm:$0xff] %v1095_v13  ;;  %v1098_v17 = vadd.f32 %v1414_v16, %v1206_v4  ;;  %v1089_v18 = vpop.f32.mrb[39].mxu0 }
 0x3e0   :  { %1137 = vst [vmem:[%s1886_s9 + $0x20] sm:$0xff] %v1087_v15  ;;  %v1090_v19 = vadd.f32 %v1206_v4, %v1089_v18 }
 0x3e1   :  { %1140 = vst [vmem:[%s1886_s9 + $0x38] sm:$0xff] %v1098_v17 }
 0x3e2   :  { %1138 = vst [vmem:[%s1886_s9 + $0x28] sm:$0xff] %v1090_v19 }
 0x3ec   :  { %v1417_v20 = vpop.f32.mrb[32].mxu1 }
 0x3ed   :  { %v1111_v21 = vadd.f32 %v1417_v20, %v1206_v4  ;;  %v1102_v22 = vpop.f32.mrb[33].mxu1 }
 0x3ee   :  { %v1103_v23 = vadd.f32 %v1206_v4, %v1102_v22  ;;  %v1418_v24 = vpop.f32.mrb[34].mxu1 }
 0x3ef   :  { %1143 = vst [vmem:[%s1886_s9 + $0x50] sm:$0xff] %v1111_v21  ;;  %v1114_v25 = vadd.f32 %v1418_v24, %v1206_v4  ;;  %v1105_v26 = vpop.f32.mrb[35].mxu1 }
 0x3f0   :  { %1141 = vst [vmem:[%s1886_s9 + $0x40] sm:$0xff] %v1103_v23  ;;  %v1106_v27 = vadd.f32 %v1206_v4, %v1105_v26 }
 0x3f1   :  { %1144 = vst [vmem:[%s1886_s9 + $0x58] sm:$0xff] %v1114_v25 }
 0x3f2   :  { %1142 = vst [vmem:[%s1886_s9 + $0x48] sm:$0xff] %v1106_v27 }
 0x3fc   :  { %v1421_v28 = vpop.f32.mrb[36].mxu1 }
 0x3fd   :  { %v1127_v29 = vadd.f32 %v1421_v28, %v1206_v4  ;;  %v1118_v30 = vpop.f32.mrb[37].mxu1 }
 0x3fe   :  { %v1119_v31 = vadd.f32 %v1206_v4, %v1118_v30  ;;  %v1422_v32 = vpop.f32.mrb[38].mxu1 }
 0x3ff   :  { %1147 = vst [vmem:[%s1886_s9 + $0x70] sm:$0xff] %v1127_v29  ;;  %v1130_v33 = vadd.f32 %v1422_v32, %v1206_v4  ;;  %v1121_v34 = vpop.f32.mrb[39].mxu1 }
 0x400   :  { %1145 = vst [vmem:[%s1886_s9 + $0x60] sm:$0xff] %v1119_v31  ;;  %v1122_v35 = vadd.f32 %v1206_v4, %v1121_v34 }
 0x401   :  { %1148 = vst [vmem:[%s1886_s9 + $0x78] sm:$0xff] %v1130_v33 }
 0x402   :  { %1146 = vst [vmem:[%s1886_s9 + $0x68] sm:$0xff] %v1122_v35 }
 0x403   :  { %1153 = vsyncpa [#allocation5], 1 }
 0x404   :  { %1154 = vsyncpa [#allocation7], 1 }

</bundles_post_ra>
